<compile_context>
chip_gen: v5e
topology: v5e:2x2
jax: 0.10.0
libtpu: 0.0.40
codegen_flags: <defaults>
</compile_context>

<pallas_src>
import math
import functools

import jax
import jax.numpy as jnp
from jax.experimental import pallas as pl
from jax.experimental.pallas import tpu as pltpu


# --------------------------------------------------------- in-kernel helpers --

def _ln(x, g, b, eps=1e-5):
    """LayerNorm over last dim. x: (T, E) f32, g/b: (1, E) f32."""
    mu = jnp.mean(x, axis=-1, keepdims=True)
    var = jnp.mean((x - mu) ** 2, axis=-1, keepdims=True)
    return (x - mu) * jax.lax.rsqrt(var + eps) * g + b


def _mm(a, w, b=None):
    """Matmul with bf16 MXU operands, f32 accumulation, optional f32 bias."""
    y = jnp.dot(a.astype(jnp.bfloat16), w.astype(jnp.bfloat16),
                preferred_element_type=jnp.float32)
    if b is not None:
        y = y + b
    return y


def _mha(x_q, x_kv, mask, w_in, b_in, w_out, b_out, *, nhead, cross):
    """Full multi-head attention for one batch element.

    x_q: (Tq, E) f32, x_kv: (Tk, E) f32, mask: (Tq, Tk) additive f32 (shared by heads).
    w_in: (E, 3E) (transposed PyTorch in_proj_weight), w_out: (E, E).
    """
    Tq, E = x_q.shape
    Dh = E // nhead
    scale = 1.0 / math.sqrt(Dh)

    if cross:
        q = _mm(x_q, w_in[:, :E], b_in[:, :E]) * scale          # (Tq, E)
        kv = _mm(x_kv, w_in[:, E:], b_in[:, E:])                 # (Tk, 2E)
        k = kv[:, :E]
        v = kv[:, E:]
    else:
        qkv = _mm(x_q, w_in, b_in)                               # (Tq, 3E) one matmul
        q = qkv[:, :E] * scale
        k = qkv[:, E:2 * E]
        v = qkv[:, 2 * E:]

    heads = []
    for h in range(nhead):                                       # static unroll
        qh = q[:, h * Dh:(h + 1) * Dh]
        kh = k[:, h * Dh:(h + 1) * Dh]
        vh = v[:, h * Dh:(h + 1) * Dh]
        s = jax.lax.dot_general(qh.astype(jnp.bfloat16), kh.astype(jnp.bfloat16),
                                (((1,), (1,)), ((), ())),
                                preferred_element_type=jnp.float32)   # (Tq, Tk)
        s = s + mask
        s = s - jnp.max(s, axis=-1, keepdims=True)
        p = jnp.exp(s)
        p = p * pl.reciprocal(jnp.sum(p, axis=-1, keepdims=True), approx=True)
        heads.append(jnp.dot(p.astype(jnp.bfloat16), vh.astype(jnp.bfloat16),
                             preferred_element_type=jnp.float32))     # (Tq, Dh)
    o = jnp.concatenate(heads, axis=-1)                               # (Tq, E)
    return _mm(o, w_out, b_out)


# ------------------------------------------------------------------ kernels --

def _enc_layer_kernel(x_ref, mask_ref,
                      w_in_ref, b_in_ref, w_out_ref, b_out_ref,
                      g1_ref, n1b_ref,
                      w1_ref, c1_ref, w2_ref, c2_ref,
                      g2_ref, n2b_ref,
                      o_ref, *, nhead):
    x = x_ref[0]                                                  # (T, E)
    attn = _mha(x, x, mask_ref[0],
                w_in_ref[...], b_in_ref[...], w_out_ref[...], b_out_ref[...],
                nhead=nhead, cross=False)
    h = _ln(x + attn, g1_ref[...], n1b_ref[...])                  # residual + LN1
    f = jnp.maximum(_mm(h, w1_ref[...], c1_ref[...]), 0.0)        # FFN
    f = _mm(f, w2_ref[...], c2_ref[...])
    o_ref[0] = _ln(h + f, g2_ref[...], n2b_ref[...])              # residual + LN2


def _dec_layer_kernel(y_ref, mem_ref, smask_ref, mmask_ref,
                      sw_in_ref, sb_in_ref, sw_out_ref, sb_out_ref,
                      g1_ref, n1b_ref,
                      cw_in_ref, cb_in_ref, cw_out_ref, cb_out_ref,
                      g2_ref, n2b_ref,
                      w1_ref, c1_ref, w2_ref, c2_ref,
                      g3_ref, n3b_ref,
                      o_ref, *, nhead):
    y = y_ref[0]                                                  # (Tt, E)
    mem = mem_ref[0]                                              # (Ts, E)
    sa = _mha(y, y, smask_ref[0],
              sw_in_ref[...], sb_in_ref[...], sw_out_ref[...], sb_out_ref[...],
              nhead=nhead, cross=False)
    y = _ln(y + sa, g1_ref[...], n1b_ref[...])
    ca = _mha(y, mem, mmask_ref[0],
              cw_in_ref[...], cb_in_ref[...], cw_out_ref[...], cb_out_ref[...],
              nhead=nhead, cross=True)
    y = _ln(y + ca, g2_ref[...], n2b_ref[...])
    f = jnp.maximum(_mm(y, w1_ref[...], c1_ref[...]), 0.0)
    f = _mm(f, w2_ref[...], c2_ref[...])
    o_ref[0] = _ln(y + f, g3_ref[...], n3b_ref[...])


def _final_ln_kernel(x_ref, g_ref, b_ref, o_ref):
    o_ref[0] = _ln(x_ref[0], g_ref[...], b_ref[...])


def _final_ln_linear_kernel(x_ref, g_ref, b_ref, w_ref, c_ref, o_ref):
    h = _ln(x_ref[0], g_ref[...], b_ref[...])
    o_ref[0] = _mm(h, w_ref[...], c_ref[...])


# ------------------------------------------------------------ pallas wrappers --

def _full2(shape):
    return pl.BlockSpec(shape, lambda b: (0, 0))


def _per_batch(shape):
    return pl.BlockSpec(shape, lambda b: (b, 0, 0))


_PAR = pltpu.CompilerParams(dimension_semantics=("parallel",))


def encoder_layer(x, mask, p, nhead):
    B, T, E = x.shape
    FF = p["linear1"]["w"].shape[1]
    kern = functools.partial(_enc_layer_kernel, nhead=nhead)
    return pl.pallas_call(
        kern,
        out_shape=jax.ShapeDtypeStruct((B, T, E), jnp.float32),
        grid=(B,),
        in_specs=[
            _per_batch((1, T, E)),                       # x
            _per_batch((1, T, T)),                       # additive mask
            _full2((E, 3 * E)), _full2((1, 3 * E)),      # attn in-proj
            _full2((E, E)), _full2((1, E)),              # attn out-proj
            _full2((1, E)), _full2((1, E)),              # norm1
            _full2((E, FF)), _full2((1, FF)),            # linear1
            _full2((FF, E)), _full2((1, E)),             # linear2
            _full2((1, E)), _full2((1, E)),              # norm2
        ],
        out_specs=_per_batch((1, T, E)),
        compiler_params=_PAR,
    )(x, mask,
      p["self_attn"]["w_in"], p["self_attn"]["b_in"].reshape(1, 3 * E),
      p["self_attn"]["w_out"], p["self_attn"]["b_out"].reshape(1, E),
      p["norm1"]["g"].reshape(1, E), p["norm1"]["b"].reshape(1, E),
      p["linear1"]["w"], p["linear1"]["b"].reshape(1, FF),
      p["linear2"]["w"], p["linear2"]["b"].reshape(1, E),
      p["norm2"]["g"].reshape(1, E), p["norm2"]["b"].reshape(1, E))


def decoder_layer(y, memory, self_mask, mem_mask, p, nhead):
    B, Tt, E = y.shape
    Ts = memory.shape[1]
    FF = p["linear1"]["w"].shape[1]
    kern = functools.partial(_dec_layer_kernel, nhead=nhead)
    return pl.pallas_call(
        kern,
        out_shape=jax.ShapeDtypeStruct((B, Tt, E), jnp.float32),
        grid=(B,),
        in_specs=[
            _per_batch((1, Tt, E)),                      # y
            _per_batch((1, Ts, E)),                      # memory
            _per_batch((1, Tt, Tt)),                     # self-attn mask
            _per_batch((1, Tt, Ts)),                     # cross-attn mask
            _full2((E, 3 * E)), _full2((1, 3 * E)),      # self-attn in-proj
            _full2((E, E)), _full2((1, E)),              # self-attn out-proj
            _full2((1, E)), _full2((1, E)),              # norm1
            _full2((E, 3 * E)), _full2((1, 3 * E)),      # cross-attn in-proj
            _full2((E, E)), _full2((1, E)),              # cross-attn out-proj
            _full2((1, E)), _full2((1, E)),              # norm2
            _full2((E, FF)), _full2((1, FF)),            # linear1
            _full2((FF, E)), _full2((1, E)),             # linear2
            _full2((1, E)), _full2((1, E)),              # norm3
        ],
        out_specs=_per_batch((1, Tt, E)),
        compiler_params=_PAR,
    )(y, memory, self_mask, mem_mask,
      p["self_attn"]["w_in"], p["self_attn"]["b_in"].reshape(1, 3 * E),
      p["self_attn"]["w_out"], p["self_attn"]["b_out"].reshape(1, E),
      p["norm1"]["g"].reshape(1, E), p["norm1"]["b"].reshape(1, E),
      p["cross_attn"]["w_in"], p["cross_attn"]["b_in"].reshape(1, 3 * E),
      p["cross_attn"]["w_out"], p["cross_attn"]["b_out"].reshape(1, E),
      p["norm2"]["g"].reshape(1, E), p["norm2"]["b"].reshape(1, E),
      p["linear1"]["w"], p["linear1"]["b"].reshape(1, FF),
      p["linear2"]["w"], p["linear2"]["b"].reshape(1, E),
      p["norm3"]["g"].reshape(1, E), p["norm3"]["b"].reshape(1, E))


def final_layernorm(x, p):
    B, T, E = x.shape
    return pl.pallas_call(
        _final_ln_kernel,
        out_shape=jax.ShapeDtypeStruct((B, T, E), jnp.float32),
        grid=(B,),
        in_specs=[_per_batch((1, T, E)), _full2((1, E)), _full2((1, E))],
        out_specs=_per_batch((1, T, E)),
        compiler_params=_PAR,
    )(x, p["g"].reshape(1, E), p["b"].reshape(1, E))


def final_ln_generator(y, norm_p, gen_p):
    B, T, E = y.shape
    V = gen_p["w"].shape[1]
    return pl.pallas_call(
        _final_ln_linear_kernel,
        out_shape=jax.ShapeDtypeStruct((B, T, V), jnp.float32),
        grid=(B,),
        in_specs=[_per_batch((1, T, E)),
                  _full2((1, E)), _full2((1, E)),
                  _full2((E, V)), _full2((1, V))],
        out_specs=_per_batch((1, T, V)),
        compiler_params=_PAR,
    )(y, norm_p["g"].reshape(1, E), norm_p["b"].reshape(1, E),
      gen_p["w"], gen_p["b"].reshape(1, V))


# --------------------------------------------------------------- model glue --

def make_pos_embedding(maxlen, d):
    den = jnp.exp(-jnp.arange(0, d, 2, dtype=jnp.float32) * math.log(1000.0) / d)
    pos = jnp.arange(0, maxlen, dtype=jnp.float32).reshape(maxlen, 1)
    pe = jnp.zeros((maxlen, d), jnp.float32)
    pe = pe.at[:, 0::2].set(jnp.sin(pos * den))
    pe = pe.at[:, 1::2].set(jnp.cos(pos * den))
    return pe[:, None, :]  # (maxlen, 1, d)


def my_transformer_forward(params, src, tgt, src_mask, tgt_mask,
                           src_padding_mask, tgt_padding_mask,
                           memory_key_padding_mask, nhead):
    E = params["src_emb"].shape[1]
    Ts, B = src.shape
    Tt = tgt.shape[0]

    # TODO(synk): dropout omitted (deterministic eval-mode forward); token-embedding
    # gather stays in XLA (no clean tiny-Pallas gather equivalent).
    pos = params["pos_emb"][:, 0, :]                         # (maxlen, E)
    src_x = jnp.take(params["src_emb"], src.T, axis=0) * math.sqrt(E) + pos[None, :Ts, :]
    tgt_x = jnp.take(params["tgt_emb"], tgt.T, axis=0) * math.sqrt(E) + pos[None, :Tt, :]

    # Combined per-batch additive masks, built once (layer-invariant, heads share).
    neg = jnp.float32(-1e9)
    src_bias = (jnp.broadcast_to(src_mask[None], (B, Ts, Ts))
                + jnp.where(src_padding_mask[:, None, :], neg, 0.0))
    tgt_bias = (jnp.broadcast_to(tgt_mask[None], (B, Tt, Tt))
                + jnp.where(tgt_padding_mask[:, None, :], neg, 0.0))
    mem_bias = jnp.broadcast_to(
        jnp.where(memory_key_padding_mask[:, None, :], neg, 0.0), (B, Tt, Ts))

    x = src_x
    for lp in params["enc_layers"]:
        x = encoder_layer(x, src_bias, lp, nhead)
    memory = final_layernorm(x, params["enc_norm"])

    y = tgt_x
    for lp in params["dec_layers"]:
        y = decoder_layer(y, memory, tgt_bias, mem_bias, lp, nhead)

    out = final_ln_generator(y, params["dec_norm"], params["generator"])
    return jnp.transpose(out, (1, 0, 2))                     # (T_tgt, B, V)


# ---------------------------------------------------------------- init utils --

def _lin(key, din, dout):
    kw, kb = jax.random.split(key)
    return {"w": 0.05 * jax.random.normal(kw, (din, dout), jnp.float32),
            "b": 0.01 * jax.random.normal(kb, (dout,), jnp.float32)}


def _attn_params(key, e):
    k1, k2, k3, k4 = jax.random.split(key, 4)
    return {"w_in": 0.05 * jax.random.normal(k1, (e, 3 * e), jnp.float32),
            "b_in": 0.01 * jax.random.normal(k2, (3 * e,), jnp.float32),
            "w_out": 0.05 * jax.random.normal(k3, (e, e), jnp.float32),
            "b_out": 0.01 * jax.random.normal(k4, (e,), jnp.float32)}


def _ln_params(e):
    return {"g": jnp.ones((e,), jnp.float32), "b": jnp.zeros((e,), jnp.float32)}


def init_params(key, n_enc, n_dec, e, ff, src_vocab, tgt_vocab, maxlen=64):
    keys = jax.random.split(key, 4 + n_enc + n_dec)
    params = {
        "src_emb": 0.05 * jax.random.normal(keys[0], (src_vocab, e), jnp.float32),
        "tgt_emb": 0.05 * jax.random.normal(keys[1], (tgt_vocab, e), jnp.float32),
        "pos_emb": make_pos_embedding(maxlen, e),
        "enc_layers": [],
        "dec_layers": [],
        "enc_norm": _ln_params(e),
        "dec_norm": _ln_params(e),
        "generator": _lin(keys[2], e, tgt_vocab),
    }
    for i in range(n_enc):
        k = jax.random.split(keys[4 + i], 3)
        params["enc_layers"].append({
            "self_attn": _attn_params(k[0], e),
            "linear1": _lin(k[1], e, ff),
            "linear2": _lin(k[2], ff, e),
            "norm1": _ln_params(e),
            "norm2": _ln_params(e),
        })
    for i in range(n_dec):
        k = jax.random.split(keys[4 + n_enc + i], 4)
        params["dec_layers"].append({
            "self_attn": _attn_params(k[0], e),
            "cross_attn": _attn_params(k[1], e),
            "linear1": _lin(k[2], e, ff),
            "linear2": _lin(k[3], ff, e),
            "norm1": _ln_params(e),
            "norm2": _ln_params(e),
            "norm3": _ln_params(e),
        })
    return params


# --------------------------------------------------------------------- main --

if __name__ == "__main__":
    NUM_ENC, NUM_DEC = 2, 2
    EMB, NHEAD, FF = 32, 4, 64
    SRC_VOCAB, TGT_VOCAB = 48, 40
    T_SRC, T_TGT, BATCH = 8, 6, 2

    root = jax.random.PRNGKey(0)
    kp, ks, kt = jax.random.split(root, 3)
    params = init_params(kp, NUM_ENC, NUM_DEC, EMB, FF, SRC_VOCAB, TGT_VOCAB)

    src = jax.random.randint(ks, (T_SRC, BATCH), 0, SRC_VOCAB, dtype=jnp.int32)
    tgt = jax.random.randint(kt, (T_TGT, BATCH), 0, TGT_VOCAB, dtype=jnp.int32)

    # src_mask: full zeros (no masking); tgt_mask: causal additive mask
    src_mask = jnp.zeros((T_SRC, T_SRC), jnp.float32)
    tgt_mask = jnp.where(jnp.triu(jnp.ones((T_TGT, T_TGT), jnp.bool_), k=1),
                         -1e9, 0.0).astype(jnp.float32)
    # padding masks: True = padded position (last src token of batch elem 1 padded)
    src_padding_mask = jnp.zeros((BATCH, T_SRC), jnp.bool_).at[1, -1].set(True)
    tgt_padding_mask = jnp.zeros((BATCH, T_TGT), jnp.bool_).at[1, -1].set(True)
    memory_key_padding_mask = src_padding_mask

    out = my_transformer_forward(params, src, tgt, src_mask, tgt_mask,
                                 src_padding_mask, tgt_padding_mask,
                                 memory_key_padding_mask, NHEAD)
    out = jax.block_until_ready(out)
    assert out.shape == (T_TGT, BATCH, TGT_VOCAB)
    assert bool(jnp.all(jnp.isfinite(out)))
    print("KERNEL_OK")
</pallas_src>

<mosaic_0001>
module attributes {stable_mosaic.version = 11 : i64} {
  func.func @_enc_layer_kernel(%arg0: i32, %arg1: memref<1x8x32xf32, #tpu.memory_space<vmem>>, %arg2: memref<1x8x8xf32, #tpu.memory_space<vmem>>, %arg3: memref<32x96xf32, #tpu.memory_space<vmem>>, %arg4: memref<1x96xf32, #tpu.memory_space<vmem>>, %arg5: memref<32x32xf32, #tpu.memory_space<vmem>>, %arg6: memref<1x32xf32, #tpu.memory_space<vmem>>, %arg7: memref<1x32xf32, #tpu.memory_space<vmem>>, %arg8: memref<1x32xf32, #tpu.memory_space<vmem>>, %arg9: memref<32x64xf32, #tpu.memory_space<vmem>>, %arg10: memref<1x64xf32, #tpu.memory_space<vmem>>, %arg11: memref<64x32xf32, #tpu.memory_space<vmem>>, %arg12: memref<1x32xf32, #tpu.memory_space<vmem>>, %arg13: memref<1x32xf32, #tpu.memory_space<vmem>>, %arg14: memref<1x32xf32, #tpu.memory_space<vmem>>, %arg15: memref<1x8x32xf32, #tpu.memory_space<vmem>>) attributes {dimension_semantics = [#tpu.dimension_semantics<parallel>], iteration_bounds = array<i64: 2>, scalar_prefetch = 0 : i64, scratch_operands = 0 : i64, tpu.core_type = #tpu.core_type<tc>, window_params = [{transform_indices = @transform_0, window_bounds = array<i64: 1, 8, 32>}, {transform_indices = @transform_1, window_bounds = array<i64: 1, 8, 8>}, {pipeline_mode = #tpu.pipeline_mode<synchronous>, transform_indices = @transform_2, window_bounds = array<i64: 32, 96>}, {pipeline_mode = #tpu.pipeline_mode<synchronous>, transform_indices = @transform_3, window_bounds = array<i64: 1, 96>}, {pipeline_mode = #tpu.pipeline_mode<synchronous>, transform_indices = @transform_4, window_bounds = array<i64: 32, 32>}, {pipeline_mode = #tpu.pipeline_mode<synchronous>, transform_indices = @transform_5, window_bounds = array<i64: 1, 32>}, {pipeline_mode = #tpu.pipeline_mode<synchronous>, transform_indices = @transform_6, window_bounds = array<i64: 1, 32>}, {pipeline_mode = #tpu.pipeline_mode<synchronous>, transform_indices = @transform_7, window_bounds = array<i64: 1, 32>}, {pipeline_mode = #tpu.pipeline_mode<synchronous>, transform_indices = @transform_8, window_bounds = array<i64: 32, 64>}, {pipeline_mode = #tpu.pipeline_mode<synchronous>, transform_indices = @transform_9, window_bounds = array<i64: 1, 64>}, {pipeline_mode = #tpu.pipeline_mode<synchronous>, transform_indices = @transform_10, window_bounds = array<i64: 64, 32>}, {pipeline_mode = #tpu.pipeline_mode<synchronous>, transform_indices = @transform_11, window_bounds = array<i64: 1, 32>}, {pipeline_mode = #tpu.pipeline_mode<synchronous>, transform_indices = @transform_12, window_bounds = array<i64: 1, 32>}, {pipeline_mode = #tpu.pipeline_mode<synchronous>, transform_indices = @transform_13, window_bounds = array<i64: 1, 32>}, {transform_indices = @transform_14, window_bounds = array<i64: 1, 8, 32>}]} {
    %c0 = arith.constant 0 : index
    %c0_0 = arith.constant 0 : index
    %c0_1 = arith.constant 0 : index
    %0 = vector.load %arg1[%c0, %c0_0, %c0_1] : memref<1x8x32xf32, #tpu.memory_space<vmem>>, vector<1x8x32xf32>
    %1 = vector.shape_cast %0 : vector<1x8x32xf32> to vector<8x32xf32>
    %c0_2 = arith.constant 0 : index
    %c0_3 = arith.constant 0 : index
    %c0_4 = arith.constant 0 : index
    %2 = vector.load %arg2[%c0_2, %c0_3, %c0_4] : memref<1x8x8xf32, #tpu.memory_space<vmem>>, vector<1x8x8xf32>
    %3 = vector.shape_cast %2 : vector<1x8x8xf32> to vector<8x8xf32>
    %c0_5 = arith.constant 0 : index
    %c0_6 = arith.constant 0 : index
    %4 = vector.load %arg3[%c0_5, %c0_6] : memref<32x96xf32, #tpu.memory_space<vmem>>, vector<32x96xf32>
    %c0_7 = arith.constant 0 : index
    %c0_8 = arith.constant 0 : index
    %5 = vector.load %arg4[%c0_7, %c0_8] : memref<1x96xf32, #tpu.memory_space<vmem>>, vector<1x96xf32>
    %c0_9 = arith.constant 0 : index
    %c0_10 = arith.constant 0 : index
    %6 = vector.load %arg5[%c0_9, %c0_10] : memref<32x32xf32, #tpu.memory_space<vmem>>, vector<32x32xf32>
    %c0_11 = arith.constant 0 : index
    %c0_12 = arith.constant 0 : index
    %7 = vector.load %arg6[%c0_11, %c0_12] : memref<1x32xf32, #tpu.memory_space<vmem>>, vector<1x32xf32>
    %8 = arith.truncf %1 : vector<8x32xf32> to vector<8x32xbf16>
    %9 = arith.truncf %4 : vector<32x96xf32> to vector<32x96xbf16>
    %cst = arith.constant dense<0.000000e+00> : vector<8x96xf32>
    %10 = tpu.matmul %8, %9, %cst {dimension_numbers = #tpu.dot_dimension_numbers<[1], [0], [0], [1], [0, 0, 1, 1], [], []>} : vector<8x32xbf16>, vector<32x96xbf16>, vector<8x96xf32> -> vector<8x96xf32>
    %11 = vector.broadcast %5 : vector<1x96xf32> to vector<8x96xf32>
    %12 = arith.addf %10, %11 : vector<8x96xf32>
    %13 = vector.extract_strided_slice %12 {offsets = [0, 0], sizes = [8, 32], strides = [1, 1]} : vector<8x96xf32> to vector<8x32xf32>
    %cst_13 = arith.constant 0.353553385 : f32
    %14 = vector.broadcast %cst_13 : f32 to vector<8x32xf32>
    %15 = arith.mulf %13, %14 : vector<8x32xf32>
    %16 = vector.extract_strided_slice %12 {offsets = [0, 32], sizes = [8, 32], strides = [1, 1]} : vector<8x96xf32> to vector<8x32xf32>
    %17 = vector.extract_strided_slice %12 {offsets = [0, 64], sizes = [8, 32], strides = [1, 1]} : vector<8x96xf32> to vector<8x32xf32>
    %18 = vector.extract_strided_slice %15 {offsets = [0, 0], sizes = [8, 8], strides = [1, 1]} : vector<8x32xf32> to vector<8x8xf32>
    %19 = vector.extract_strided_slice %16 {offsets = [0, 0], sizes = [8, 8], strides = [1, 1]} : vector<8x32xf32> to vector<8x8xf32>
    %20 = vector.extract_strided_slice %17 {offsets = [0, 0], sizes = [8, 8], strides = [1, 1]} : vector<8x32xf32> to vector<8x8xf32>
    %21 = arith.truncf %18 : vector<8x8xf32> to vector<8x8xbf16>
    %22 = arith.truncf %19 : vector<8x8xf32> to vector<8x8xbf16>
    %cst_14 = arith.constant dense<0.000000e+00> : vector<8x8xf32>
    %23 = tpu.matmul %21, %22, %cst_14 {dimension_numbers = #tpu.dot_dimension_numbers<[1], [1], [0], [0], [0, 0, 1, 0], [], []>} : vector<8x8xbf16>, vector<8x8xbf16>, vector<8x8xf32> -> vector<8x8xf32>
    %24 = arith.addf %23, %3 : vector<8x8xf32>
    %cst_15 = arith.constant dense<0xFF800000> : vector<8xf32>
    %25 = vector.multi_reduction <maximumf>, %24, %cst_15 [1] : vector<8x8xf32> to vector<8xf32>
    %26 = vector.shape_cast %25 : vector<8xf32> to vector<8x1xf32>
    %27 = vector.broadcast %26 : vector<8x1xf32> to vector<8x8xf32>
    %28 = arith.subf %24, %27 : vector<8x8xf32>
    %29 = math.exp %28 : vector<8x8xf32>
    %cst_16 = arith.constant dense<0.000000e+00> : vector<8xf32>
    %30 = vector.multi_reduction <add>, %29, %cst_16 [1] : vector<8x8xf32> to vector<8xf32>
    %31 = vector.shape_cast %30 : vector<8xf32> to vector<8x1xf32>
    %32 = tpu.reciprocal %31 {approx = true} : vector<8x1xf32> -> vector<8x1xf32>
    %33 = vector.broadcast %32 : vector<8x1xf32> to vector<8x8xf32>
    %34 = arith.mulf %29, %33 : vector<8x8xf32>
    %35 = arith.truncf %34 : vector<8x8xf32> to vector<8x8xbf16>
    %36 = arith.truncf %20 : vector<8x8xf32> to vector<8x8xbf16>
    %cst_17 = arith.constant dense<0.000000e+00> : vector<8x8xf32>
    %37 = tpu.matmul %35, %36, %cst_17 {dimension_numbers = #tpu.dot_dimension_numbers<[1], [0], [0], [1], [0, 0, 1, 1], [], []>} : vector<8x8xbf16>, vector<8x8xbf16>, vector<8x8xf32> -> vector<8x8xf32>
    %38 = vector.extract_strided_slice %15 {offsets = [0, 8], sizes = [8, 8], strides = [1, 1]} : vector<8x32xf32> to vector<8x8xf32>
    %39 = vector.extract_strided_slice %16 {offsets = [0, 8], sizes = [8, 8], strides = [1, 1]} : vector<8x32xf32> to vector<8x8xf32>
    %40 = vector.extract_strided_slice %17 {offsets = [0, 8], sizes = [8, 8], strides = [1, 1]} : vector<8x32xf32> to vector<8x8xf32>
    %41 = arith.truncf %38 : vector<8x8xf32> to vector<8x8xbf16>
    %42 = arith.truncf %39 : vector<8x8xf32> to vector<8x8xbf16>
    %cst_18 = arith.constant dense<0.000000e+00> : vector<8x8xf32>
    %43 = tpu.matmul %41, %42, %cst_18 {dimension_numbers = #tpu.dot_dimension_numbers<[1], [1], [0], [0], [0, 0, 1, 0], [], []>} : vector<8x8xbf16>, vector<8x8xbf16>, vector<8x8xf32> -> vector<8x8xf32>
    %44 = arith.addf %43, %3 : vector<8x8xf32>
    %cst_19 = arith.constant dense<0xFF800000> : vector<8xf32>
    %45 = vector.multi_reduction <maximumf>, %44, %cst_19 [1] : vector<8x8xf32> to vector<8xf32>
    %46 = vector.shape_cast %45 : vector<8xf32> to vector<8x1xf32>
    %47 = vector.broadcast %46 : vector<8x1xf32> to vector<8x8xf32>
    %48 = arith.subf %44, %47 : vector<8x8xf32>
    %49 = math.exp %48 : vector<8x8xf32>
    %cst_20 = arith.constant dense<0.000000e+00> : vector<8xf32>
    %50 = vector.multi_reduction <add>, %49, %cst_20 [1] : vector<8x8xf32> to vector<8xf32>
    %51 = vector.shape_cast %50 : vector<8xf32> to vector<8x1xf32>
    %52 = tpu.reciprocal %51 {approx = true} : vector<8x1xf32> -> vector<8x1xf32>
    %53 = vector.broadcast %52 : vector<8x1xf32> to vector<8x8xf32>
    %54 = arith.mulf %49, %53 : vector<8x8xf32>
    %55 = arith.truncf %54 : vector<8x8xf32> to vector<8x8xbf16>
    %56 = arith.truncf %40 : vector<8x8xf32> to vector<8x8xbf16>
    %cst_21 = arith.constant dense<0.000000e+00> : vector<8x8xf32>
    %57 = tpu.matmul %55, %56, %cst_21 {dimension_numbers = #tpu.dot_dimension_numbers<[1], [0], [0], [1], [0, 0, 1, 1], [], []>} : vector<8x8xbf16>, vector<8x8xbf16>, vector<8x8xf32> -> vector<8x8xf32>
    %58 = vector.extract_strided_slice %15 {offsets = [0, 16], sizes = [8, 8], strides = [1, 1]} : vector<8x32xf32> to vector<8x8xf32>
    %59 = vector.extract_strided_slice %16 {offsets = [0, 16], sizes = [8, 8], strides = [1, 1]} : vector<8x32xf32> to vector<8x8xf32>
    %60 = vector.extract_strided_slice %17 {offsets = [0, 16], sizes = [8, 8], strides = [1, 1]} : vector<8x32xf32> to vector<8x8xf32>
    %61 = arith.truncf %58 : vector<8x8xf32> to vector<8x8xbf16>
    %62 = arith.truncf %59 : vector<8x8xf32> to vector<8x8xbf16>
    %cst_22 = arith.constant dense<0.000000e+00> : vector<8x8xf32>
    %63 = tpu.matmul %61, %62, %cst_22 {dimension_numbers = #tpu.dot_dimension_numbers<[1], [1], [0], [0], [0, 0, 1, 0], [], []>} : vector<8x8xbf16>, vector<8x8xbf16>, vector<8x8xf32> -> vector<8x8xf32>
    %64 = arith.addf %63, %3 : vector<8x8xf32>
    %cst_23 = arith.constant dense<0xFF800000> : vector<8xf32>
    %65 = vector.multi_reduction <maximumf>, %64, %cst_23 [1] : vector<8x8xf32> to vector<8xf32>
    %66 = vector.shape_cast %65 : vector<8xf32> to vector<8x1xf32>
    %67 = vector.broadcast %66 : vector<8x1xf32> to vector<8x8xf32>
    %68 = arith.subf %64, %67 : vector<8x8xf32>
    %69 = math.exp %68 : vector<8x8xf32>
    %cst_24 = arith.constant dense<0.000000e+00> : vector<8xf32>
    %70 = vector.multi_reduction <add>, %69, %cst_24 [1] : vector<8x8xf32> to vector<8xf32>
    %71 = vector.shape_cast %70 : vector<8xf32> to vector<8x1xf32>
    %72 = tpu.reciprocal %71 {approx = true} : vector<8x1xf32> -> vector<8x1xf32>
    %73 = vector.broadcast %72 : vector<8x1xf32> to vector<8x8xf32>
    %74 = arith.mulf %69, %73 : vector<8x8xf32>
    %75 = arith.truncf %74 : vector<8x8xf32> to vector<8x8xbf16>
    %76 = arith.truncf %60 : vector<8x8xf32> to vector<8x8xbf16>
    %cst_25 = arith.constant dense<0.000000e+00> : vector<8x8xf32>
    %77 = tpu.matmul %75, %76, %cst_25 {dimension_numbers = #tpu.dot_dimension_numbers<[1], [0], [0], [1], [0, 0, 1, 1], [], []>} : vector<8x8xbf16>, vector<8x8xbf16>, vector<8x8xf32> -> vector<8x8xf32>
    %78 = vector.extract_strided_slice %15 {offsets = [0, 24], sizes = [8, 8], strides = [1, 1]} : vector<8x32xf32> to vector<8x8xf32>
    %79 = vector.extract_strided_slice %16 {offsets = [0, 24], sizes = [8, 8], strides = [1, 1]} : vector<8x32xf32> to vector<8x8xf32>
    %80 = vector.extract_strided_slice %17 {offsets = [0, 24], sizes = [8, 8], strides = [1, 1]} : vector<8x32xf32> to vector<8x8xf32>
    %81 = arith.truncf %78 : vector<8x8xf32> to vector<8x8xbf16>
    %82 = arith.truncf %79 : vector<8x8xf32> to vector<8x8xbf16>
    %cst_26 = arith.constant dense<0.000000e+00> : vector<8x8xf32>
    %83 = tpu.matmul %81, %82, %cst_26 {dimension_numbers = #tpu.dot_dimension_numbers<[1], [1], [0], [0], [0, 0, 1, 0], [], []>} : vector<8x8xbf16>, vector<8x8xbf16>, vector<8x8xf32> -> vector<8x8xf32>
    %84 = arith.addf %83, %3 : vector<8x8xf32>
    %cst_27 = arith.constant dense<0xFF800000> : vector<8xf32>
    %85 = vector.multi_reduction <maximumf>, %84, %cst_27 [1] : vector<8x8xf32> to vector<8xf32>
    %86 = vector.shape_cast %85 : vector<8xf32> to vector<8x1xf32>
    %87 = vector.broadcast %86 : vector<8x1xf32> to vector<8x8xf32>
    %88 = arith.subf %84, %87 : vector<8x8xf32>
    %89 = math.exp %88 : vector<8x8xf32>
    %cst_28 = arith.constant dense<0.000000e+00> : vector<8xf32>
    %90 = vector.multi_reduction <add>, %89, %cst_28 [1] : vector<8x8xf32> to vector<8xf32>
    %91 = vector.shape_cast %90 : vector<8xf32> to vector<8x1xf32>
    %92 = tpu.reciprocal %91 {approx = true} : vector<8x1xf32> -> vector<8x1xf32>
    %93 = vector.broadcast %92 : vector<8x1xf32> to vector<8x8xf32>
    %94 = arith.mulf %89, %93 : vector<8x8xf32>
    %95 = arith.truncf %94 : vector<8x8xf32> to vector<8x8xbf16>
    %96 = arith.truncf %80 : vector<8x8xf32> to vector<8x8xbf16>
    %cst_29 = arith.constant dense<0.000000e+00> : vector<8x8xf32>
    %97 = tpu.matmul %95, %96, %cst_29 {dimension_numbers = #tpu.dot_dimension_numbers<[1], [0], [0], [1], [0, 0, 1, 1], [], []>} : vector<8x8xbf16>, vector<8x8xbf16>, vector<8x8xf32> -> vector<8x8xf32>
    %98 = tpu.concatenate %37, %57, %77, %97 in 1 : vector<8x8xf32>, vector<8x8xf32>, vector<8x8xf32>, vector<8x8xf32> -> vector<8x32xf32>
    %99 = arith.truncf %98 : vector<8x32xf32> to vector<8x32xbf16>
    %100 = arith.truncf %6 : vector<32x32xf32> to vector<32x32xbf16>
    %cst_30 = arith.constant dense<0.000000e+00> : vector<8x32xf32>
    %101 = tpu.matmul %99, %100, %cst_30 {dimension_numbers = #tpu.dot_dimension_numbers<[1], [0], [0], [1], [0, 0, 1, 1], [], []>} : vector<8x32xbf16>, vector<32x32xbf16>, vector<8x32xf32> -> vector<8x32xf32>
    %102 = vector.broadcast %7 : vector<1x32xf32> to vector<8x32xf32>
    %103 = arith.addf %101, %102 : vector<8x32xf32>
    %104 = arith.addf %1, %103 : vector<8x32xf32>
    %c0_31 = arith.constant 0 : index
    %c0_32 = arith.constant 0 : index
    %105 = vector.load %arg7[%c0_31, %c0_32] : memref<1x32xf32, #tpu.memory_space<vmem>>, vector<1x32xf32>
    %c0_33 = arith.constant 0 : index
    %c0_34 = arith.constant 0 : index
    %106 = vector.load %arg8[%c0_33, %c0_34] : memref<1x32xf32, #tpu.memory_space<vmem>>, vector<1x32xf32>
    %cst_35 = arith.constant dense<0.000000e+00> : vector<8xf32>
    %107 = vector.multi_reduction <add>, %104, %cst_35 [1] : vector<8x32xf32> to vector<8xf32>
    %108 = vector.shape_cast %107 : vector<8xf32> to vector<8x1xf32>
    %cst_36 = arith.constant 3.200000e+01 : f32
    %109 = vector.broadcast %cst_36 : f32 to vector<8x1xf32>
    %110 = arith.divf %108, %109 : vector<8x1xf32>
    %111 = vector.broadcast %110 : vector<8x1xf32> to vector<8x32xf32>
    %112 = arith.subf %104, %111 : vector<8x32xf32>
    %113 = arith.mulf %112, %112 : vector<8x32xf32>
    %cst_37 = arith.constant dense<0.000000e+00> : vector<8xf32>
    %114 = vector.multi_reduction <add>, %113, %cst_37 [1] : vector<8x32xf32> to vector<8xf32>
    %115 = vector.shape_cast %114 : vector<8xf32> to vector<8x1xf32>
    %cst_38 = arith.constant 3.200000e+01 : f32
    %116 = vector.broadcast %cst_38 : f32 to vector<8x1xf32>
    %117 = arith.divf %115, %116 : vector<8x1xf32>
    %118 = vector.broadcast %110 : vector<8x1xf32> to vector<8x32xf32>
    %119 = arith.subf %104, %118 : vector<8x32xf32>
    %cst_39 = arith.constant 9.99999974E-6 : f32
    %120 = vector.broadcast %cst_39 : f32 to vector<8x1xf32>
    %121 = arith.addf %117, %120 : vector<8x1xf32>
    %122 = math.rsqrt %121 : vector<8x1xf32>
    %123 = vector.broadcast %122 : vector<8x1xf32> to vector<8x32xf32>
    %124 = arith.mulf %119, %123 : vector<8x32xf32>
    %125 = vector.broadcast %105 : vector<1x32xf32> to vector<8x32xf32>
    %126 = arith.mulf %124, %125 : vector<8x32xf32>
    %127 = vector.broadcast %106 : vector<1x32xf32> to vector<8x32xf32>
    %128 = arith.addf %126, %127 : vector<8x32xf32>
    %c0_40 = arith.constant 0 : index
    %c0_41 = arith.constant 0 : index
    %129 = vector.load %arg9[%c0_40, %c0_41] : memref<32x64xf32, #tpu.memory_space<vmem>>, vector<32x64xf32>
    %c0_42 = arith.constant 0 : index
    %c0_43 = arith.constant 0 : index
    %130 = vector.load %arg10[%c0_42, %c0_43] : memref<1x64xf32, #tpu.memory_space<vmem>>, vector<1x64xf32>
    %131 = arith.truncf %128 : vector<8x32xf32> to vector<8x32xbf16>
    %132 = arith.truncf %129 : vector<32x64xf32> to vector<32x64xbf16>
    %cst_44 = arith.constant dense<0.000000e+00> : vector<8x64xf32>
    %133 = tpu.matmul %131, %132, %cst_44 {dimension_numbers = #tpu.dot_dimension_numbers<[1], [0], [0], [1], [0, 0, 1, 1], [], []>} : vector<8x32xbf16>, vector<32x64xbf16>, vector<8x64xf32> -> vector<8x64xf32>
    %134 = vector.broadcast %130 : vector<1x64xf32> to vector<8x64xf32>
    %135 = arith.addf %133, %134 : vector<8x64xf32>
    %cst_45 = arith.constant 0.000000e+00 : f32
    %136 = vector.broadcast %cst_45 : f32 to vector<8x64xf32>
    %137 = arith.maximumf %135, %136 : vector<8x64xf32>
    %c0_46 = arith.constant 0 : index
    %c0_47 = arith.constant 0 : index
    %138 = vector.load %arg11[%c0_46, %c0_47] : memref<64x32xf32, #tpu.memory_space<vmem>>, vector<64x32xf32>
    %c0_48 = arith.constant 0 : index
    %c0_49 = arith.constant 0 : index
    %139 = vector.load %arg12[%c0_48, %c0_49] : memref<1x32xf32, #tpu.memory_space<vmem>>, vector<1x32xf32>
    %140 = arith.truncf %137 : vector<8x64xf32> to vector<8x64xbf16>
    %141 = arith.truncf %138 : vector<64x32xf32> to vector<64x32xbf16>
    %cst_50 = arith.constant dense<0.000000e+00> : vector<8x32xf32>
    %142 = tpu.matmul %140, %141, %cst_50 {dimension_numbers = #tpu.dot_dimension_numbers<[1], [0], [0], [1], [0, 0, 1, 1], [], []>} : vector<8x64xbf16>, vector<64x32xbf16>, vector<8x32xf32> -> vector<8x32xf32>
    %143 = vector.broadcast %139 : vector<1x32xf32> to vector<8x32xf32>
    %144 = arith.addf %142, %143 : vector<8x32xf32>
    %145 = arith.addf %128, %144 : vector<8x32xf32>
    %c0_51 = arith.constant 0 : index
    %c0_52 = arith.constant 0 : index
    %146 = vector.load %arg13[%c0_51, %c0_52] : memref<1x32xf32, #tpu.memory_space<vmem>>, vector<1x32xf32>
    %c0_53 = arith.constant 0 : index
    %c0_54 = arith.constant 0 : index
    %147 = vector.load %arg14[%c0_53, %c0_54] : memref<1x32xf32, #tpu.memory_space<vmem>>, vector<1x32xf32>
    %cst_55 = arith.constant dense<0.000000e+00> : vector<8xf32>
    %148 = vector.multi_reduction <add>, %145, %cst_55 [1] : vector<8x32xf32> to vector<8xf32>
    %149 = vector.shape_cast %148 : vector<8xf32> to vector<8x1xf32>
    %cst_56 = arith.constant 3.200000e+01 : f32
    %150 = vector.broadcast %cst_56 : f32 to vector<8x1xf32>
    %151 = arith.divf %149, %150 : vector<8x1xf32>
    %152 = vector.broadcast %151 : vector<8x1xf32> to vector<8x32xf32>
    %153 = arith.subf %145, %152 : vector<8x32xf32>
    %154 = arith.mulf %153, %153 : vector<8x32xf32>
    %cst_57 = arith.constant dense<0.000000e+00> : vector<8xf32>
    %155 = vector.multi_reduction <add>, %154, %cst_57 [1] : vector<8x32xf32> to vector<8xf32>
    %156 = vector.shape_cast %155 : vector<8xf32> to vector<8x1xf32>
    %cst_58 = arith.constant 3.200000e+01 : f32
    %157 = vector.broadcast %cst_58 : f32 to vector<8x1xf32>
    %158 = arith.divf %156, %157 : vector<8x1xf32>
    %159 = vector.broadcast %151 : vector<8x1xf32> to vector<8x32xf32>
    %160 = arith.subf %145, %159 : vector<8x32xf32>
    %cst_59 = arith.constant 9.99999974E-6 : f32
    %161 = vector.broadcast %cst_59 : f32 to vector<8x1xf32>
    %162 = arith.addf %158, %161 : vector<8x1xf32>
    %163 = math.rsqrt %162 : vector<8x1xf32>
    %164 = vector.broadcast %163 : vector<8x1xf32> to vector<8x32xf32>
    %165 = arith.mulf %160, %164 : vector<8x32xf32>
    %166 = vector.broadcast %146 : vector<1x32xf32> to vector<8x32xf32>
    %167 = arith.mulf %165, %166 : vector<8x32xf32>
    %168 = vector.broadcast %147 : vector<1x32xf32> to vector<8x32xf32>
    %169 = arith.addf %167, %168 : vector<8x32xf32>
    %c0_60 = arith.constant 0 : index
    %c0_61 = arith.constant 0 : index
    %c0_62 = arith.constant 0 : index
    %170 = vector.load %arg15[%c0_60, %c0_61, %c0_62] : memref<1x8x32xf32, #tpu.memory_space<vmem>>, vector<1x8x32xf32>
    %171 = vector.shape_cast %170 : vector<1x8x32xf32> to vector<8x32xf32>
    %172 = vector.shape_cast %169 : vector<8x32xf32> to vector<1x8x32xf32>
    tpu.vector_store %arg15[%c0_60, %c0_61, %c0_62], %172 {strides = array<i32>} : memref<1x8x32xf32, #tpu.memory_space<vmem>>, vector<1x8x32xf32>,
    return
  }
  func.func @transform_0(%arg0: i32) -> (i32, i32, i32) {
    %c0_i32 = arith.constant 0 : i32
    %c0_i32_0 = arith.constant 0 : i32
    %c0_i32_1 = arith.constant 0 : i32
    return %arg0, %c0_i32, %c0_i32_0 : i32, i32, i32
  }
  func.func @transform_1(%arg0: i32) -> (i32, i32, i32) {
    %c0_i32 = arith.constant 0 : i32
    %c0_i32_0 = arith.constant 0 : i32
    %c0_i32_1 = arith.constant 0 : i32
    return %arg0, %c0_i32, %c0_i32_0 : i32, i32, i32
  }
  func.func @transform_2(%arg0: i32) -> (i32, i32) {
    %c0_i32 = arith.constant 0 : i32
    %c0_i32_0 = arith.constant 0 : i32
    %c0_i32_1 = arith.constant 0 : i32
    return %c0_i32, %c0_i32_0 : i32, i32
  }
  func.func @transform_3(%arg0: i32) -> (i32, i32) {
    %c0_i32 = arith.constant 0 : i32
    %c0_i32_0 = arith.constant 0 : i32
    %c0_i32_1 = arith.constant 0 : i32
    return %c0_i32, %c0_i32_0 : i32, i32
  }
  func.func @transform_4(%arg0: i32) -> (i32, i32) {
    %c0_i32 = arith.constant 0 : i32
    %c0_i32_0 = arith.constant 0 : i32
    %c0_i32_1 = arith.constant 0 : i32
    return %c0_i32, %c0_i32_0 : i32, i32
  }
  func.func @transform_5(%arg0: i32) -> (i32, i32) {
    %c0_i32 = arith.constant 0 : i32
    %c0_i32_0 = arith.constant 0 : i32
    %c0_i32_1 = arith.constant 0 : i32
    return %c0_i32, %c0_i32_0 : i32, i32
  }
  func.func @transform_6(%arg0: i32) -> (i32, i32) {
    %c0_i32 = arith.constant 0 : i32
    %c0_i32_0 = arith.constant 0 : i32
    %c0_i32_1 = arith.constant 0 : i32
    return %c0_i32, %c0_i32_0 : i32, i32
  }
  func.func @transform_7(%arg0: i32) -> (i32, i32) {
    %c0_i32 = arith.constant 0 : i32
    %c0_i32_0 = arith.constant 0 : i32
    %c0_i32_1 = arith.constant 0 : i32
    return %c0_i32, %c0_i32_0 : i32, i32
  }
  func.func @transform_8(%arg0: i32) -> (i32, i32) {
    %c0_i32 = arith.constant 0 : i32
    %c0_i32_0 = arith.constant 0 : i32
    %c0_i32_1 = arith.constant 0 : i32
    return %c0_i32, %c0_i32_0 : i32, i32
  }
  func.func @transform_9(%arg0: i32) -> (i32, i32) {
    %c0_i32 = arith.constant 0 : i32
    %c0_i32_0 = arith.constant 0 : i32
    %c0_i32_1 = arith.constant 0 : i32
    return %c0_i32, %c0_i32_0 : i32, i32
  }
  func.func @transform_10(%arg0: i32) -> (i32, i32) {
    %c0_i32 = arith.constant 0 : i32
    %c0_i32_0 = arith.constant 0 : i32
    %c0_i32_1 = arith.constant 0 : i32
    return %c0_i32, %c0_i32_0 : i32, i32
  }
  func.func @transform_11(%arg0: i32) -> (i32, i32) {
    %c0_i32 = arith.constant 0 : i32
    %c0_i32_0 = arith.constant 0 : i32
    %c0_i32_1 = arith.constant 0 : i32
    return %c0_i32, %c0_i32_0 : i32, i32
  }
  func.func @transform_12(%arg0: i32) -> (i32, i32) {
    %c0_i32 = arith.constant 0 : i32
    %c0_i32_0 = arith.constant 0 : i32
    %c0_i32_1 = arith.constant 0 : i32
    return %c0_i32, %c0_i32_0 : i32, i32
  }
  func.func @transform_13(%arg0: i32) -> (i32, i32) {
    %c0_i32 = arith.constant 0 : i32
    %c0_i32_0 = arith.constant 0 : i32
    %c0_i32_1 = arith.constant 0 : i32
    return %c0_i32, %c0_i32_0 : i32, i32
  }
  func.func @transform_14(%arg0: i32) -> (i32, i32, i32) {
    %c0_i32 = arith.constant 0 : i32
    %c0_i32_0 = arith.constant 0 : i32
    %c0_i32_1 = arith.constant 0 : i32
    return %arg0, %c0_i32, %c0_i32_0 : i32, i32, i32
  }
}

</mosaic_0001>

<bundles_post_ra>
// kernel: tpu_custom_call.1
= control target key start
LH: loop header
LB: loop body
LE: loop exit
PB: predicated region body
PF: predicated region fallthrough
CT: control target
= control target key end

     0   :  { %s1723_s0 = inlined_call_operand.hbm [shape: f32[2,8,32], index: 0, kind: input, shape index: {}]   ;;  %s1724_s1 = inlined_call_operand.hbm [shape: f32[2,8,8], index: 1, kind: input, shape index: {}]   ;;  %s1725_s2 = inlined_call_operand.vmem [shape: f32[32,96], index: 2, kind: input, shape index: {}]   ;;  %s1726_s3 = inlined_call_operand.vmem [shape: f32[1,96], index: 3, kind: input, shape index: {}]   ;;  %s1727_s4 = inlined_call_operand.vmem [shape: f32[32,32], index: 4, kind: input, shape index: {}]   ;;  %s1728_s5 = inlined_call_operand.vmem [shape: f32[1,32], index: 5, kind: input, shape index: {}]   ;;  %s1729_s6 = inlined_call_operand.vmem [shape: f32[1,32], index: 6, kind: input, shape index: {}]   ;;  %s1730_s7 = inlined_call_operand.vmem [shape: f32[1,32], index: 7, kind: input, shape index: {}]   ;;  %s1731_s8 = inlined_call_operand.vmem [shape: f32[32,64], index: 8, kind: input, shape index: {}]   ;;  %s1732_s9 = inlined_call_operand.vmem [shape: f32[1,64], index: 9, kind: input, shape index: {}]   ;;  %s1733_s10 = inlined_call_operand.vmem [shape: f32[64,32], index: 10, kind: input, shape index: {}]   ;;  %s1734_s11 = inlined_call_operand.vmem [shape: f32[1,32], index: 11, kind: input, shape index: {}]   ;;  %s1735_s12 = inlined_call_operand.vmem [shape: f32[1,32], index: 12, kind: input, shape index: {}]   ;;  %s1736_s13 = inlined_call_operand.vmem [shape: f32[1,32], index: 13, kind: input, shape index: {}]   ;;  %s1737_s14 = inlined_call_operand.hbm [shape: f32[2,8,32], index: 14, kind: output, shape index: {}]  }
   0x1   :  { %1747 = sst [smem:[#allocation18_spill]] %s1723_s0 }
   0x2   :  { %1748 = sst [smem:[#allocation19_spill]] %s1735_s12 }
   0x3   :  { %1749 = sst [smem:[#allocation20_spill]] %s1736_s13 }
   0x4   :  { %1750 = sst [smem:[#allocation21_spill]] %s1737_s14 }
   0x5   :  { %19 = vsyncpa [#allocation3], 0 }
   0x6   :  { %21 = vsyncpa [#allocation3 + $0x1], 0 }
   0x7   :  { %22 = vsyncpa [#allocation6], 0 }
   0x8   :  { %24 = vsyncpa [#allocation6 + $0x1], 0 }
   0x9   :  { %25 = vsyncpa [#allocation4], 0 }
   0xa   :  { %27 = vsyncpa [#allocation4 + $0x1], 0  ;;  %s1418_s29 = smov 0   ;;  %s1420_s30 = smov 0  }
   0xb   :  { %s1422_s15 = smov 0   ;;  %s1424_s16 = smov 0  }
   0xc LB: > { %1751 = sst [smem:[#allocation11_spill]] %s1314_s29  ;;  %s1439_s17 = sadd.s32 4294967295, %s1326_s16   ;;  %s1326_s16 = sphi %s1424_s16, %s1773_s16   ;;  %s1322_s15 = sphi %s1422_s15, %s1775_s15   ;;  %s1318_s30 = sphi %s1420_s30, %s1777_s30   ;;  %s1314_s29 = sphi %s1418_s29, %s1776_s29  }
   0xd   : > { %1752 = sst [smem:[#allocation12_spill]] %s1322_s15  ;;  %s1073_s18 = sadd.s32 4294967294, %s1326_s16  }
   0xe   : > { %1753 = sst [smem:[#allocation13_spill]] %s1439_s17  ;;  %s1443_s19 = sadd.s32 1, %s1326_s16  }
   0xf   : > { %1754 = sst [smem:[#allocation14_spill]] %s1443_s19  ;;  %s40_s20 = sadd.s32 1, %s1322_s15 }
  0x10   : > { %s37_s21 = ssub.s32 %s1326_s16, %s1443_s19  ;;  %p47_p0 = scmp.ne.s32.totalorder %s1322_s15, %s1318_s30 }
  0x11   : > { %p38_p1 = scmp.eq.s32.totalorder %s37_s21, 0  ;;  %p48_p2 = scmp.eq.s32.totalorder %s1326_s16, 0 }
  0x12   : > { %p53_p3 = scmp.ne.s32.totalorder %s1318_s30, %s1314_s29  ;;  %p54_p4 = scmp.eq.s32.totalorder %s1439_s17, 0 }
  0x13   : > { %s1455_s22 = scalar_select %p38_p1, %s1322_s15, %s40_s20  }
  0x14   : > { %p1457_p5 = por %p48_p2, %p47_p0  ;;  %p1461_p6 = por %p54_p4, %p53_p3 }
  0x15   : > { %1755 = sst [smem:[#allocation15_spill]] %s1455_s22  ;;  %p355_p7 = scmp.eq.s32.totalorder %s1439_s17, 1 }
  0x16   : > { %p361_p8 = scmp.eq.s32.totalorder %s1073_s18, 1  ;;  %p1117_p10 = scmp.lt.s32.totalorder %s1326_s16, 2 }
  0x17   : > { %p1468_p11 = por %p355_p7, %p47_p0  ;;  %s1477_s27 = sand.u32 1, %s1322_s15  }
  0x18   : > { %p1472_p12 = por %p361_p8, %p53_p3  ;;  %s1077_s28 = sshll.u32 %s1326_s16, 3 }
  0x19   : > { %s1758_s25 = scalar_select %p1468_p11, 1, 0 }
  0x1a   : > { %s1760_s26 = scalar_select %p1472_p12, 1, 0 }
  0x1b   : > { %1759 = sst [smem:[#allocation16_spill]] %s1758_s25  ;;  %s1076_s20 = sshll.u32 %s1477_s27, 3 }
  0x1c   : > { %1761 = sst [smem:[#allocation17_spill]] %s1760_s26  ;;  %s421_s29 = scalar_lea.vmem [#allocation2], %s1076_s20 }
  0x1d   : > { %s1762_s0 = sld [smem:[#allocation18_spill]]  ;;  %s429_s13 = sshll.u32 %s421_s29, 4  ;;  %s430_s13 = int_to_ptr.vmem [resolvable:$true] %s429_s13 }
  0x1e   : > { %p1486_p13 = pnand %p1117_p10, %p1457_p5  ;;  %p1080_p0 = scmp.ge.s32.totalorder %s1326_s16, 1 }
  0x1f   : > { %p453_p1 = scmp.lt.s32.totalorder %s1326_s16, 3  ;;  %s418_s15 = scalar_lea.sflag [#allocation3], %s1477_s27 }
  0x20   : > { %p1200_p3 = pneg %p1486_p13 }
  0x23   : > { %s425_s18 = scalar_lea.hbm %s1762_s0, %s1077_s28  ;;  %s1203_s23 = scalar_lea.hbm %s1762_s0, 16 }
  0x24   : > { %s427_s19 = sshll.u32 %s425_s18, 4  ;;  %s428_s19 = int_to_ptr.hbm [resolvable:$true] %s427_s19 }
  0x25   : > { %s1196_s26 = sshra.s32 %s428_s19, 4  ;;  %s1197_s26 = int_to_ptr.hbm [resolvable:$true] %s1196_s26 }
  0x26   : > { %s1198_s14 = scalar_lea.hbm %s1197_s26, 8  ;;  %p1204_p5 = scmp.lt.s32.totalorder %s1197_s26, %s1762_s0 }
  0x27   : > { %p1199_p2 = scmp.ne.s32.totalorder %s1197_s26, %s1198_s14  ;;  %p1205_p8 = scmp.lt.s32.totalorder %s1203_s23, %s1198_s14 }
  0x29   : > { %p1201_p4 = pnand %p1200_p3, %p1199_p2  ;;  %p1206_p10 = por %p1205_p8, %p1204_p5 }
  0x2b   : > { %p1202_p7 = pneg %p1201_p4 }
  0x2d   : > { %p1207_p9 = pnand %p1206_p10, %p1202_p7 }
  0x2f   : > { %1210 = shalt.err (!%p1207_p9)
}
  0x30   : > { %1109 = dma.hbm_to_vmem [thread:$0]  (!%p1486_p13), %s428_s19, 128, %s430_s13, %s418_s15  }
  0x31   : > { %p1510_p2 = pnand %p1080_p0, %p453_p1  ;;  %s444_s14 = scalar_lea.hbm %s1724_s1, %s1077_s28 }
  0x32   : > { %s446_s26 = sshll.u32 %s444_s14, 4  ;;  %s440_s23 = scalar_lea.vmem [#allocation5], %s1076_s20  ;;  %s447_s26 = int_to_ptr.hbm [resolvable:$true] %s446_s26 }
  0x33   : > { %s448_s18 = sshll.u32 %s440_s23, 4  ;;  %s437_s0 = scalar_lea.sflag [#allocation6], %s1477_s27  ;;  %s449_s18 = int_to_ptr.vmem [resolvable:$true] %s448_s18 }
  0x34   : > { %s1226_s12 = sshra.s32 %s447_s26, 4  ;;  %s1233_s19 = scalar_lea.hbm %s1724_s1, 16  ;;  %s1227_s12 = int_to_ptr.hbm [resolvable:$true] %s1226_s12 }
  0x35   : > { %s1228_s17 = scalar_lea.hbm %s1227_s12, 8  ;;  %p1234_p4 = scmp.lt.s32.totalorder %s1227_s12, %s1724_s1 }
  0x36   : > { %p1229_p9 = scmp.ne.s32.totalorder %s1227_s12, %s1228_s17  ;;  %p1235_p7 = scmp.lt.s32.totalorder %s1233_s19, %s1228_s17 }
  0x38   : > { %p1231_p0 = pnand %p1229_p9, %p1200_p3  ;;  %p1236_p5 = por %p1235_p7, %p1234_p4 }
  0x3a   : > { %p1232_p1 = pneg %p1231_p0 }
  0x3c   : > { %p1237_p8 = pnand %p1236_p5, %p1232_p1 }
  0x3e   : > { %1240 = shalt.err (!%p1237_p8)
}
  0x3f   : > { %1112 = dma.hbm_to_vmem [thread:$0]  (!%p1486_p13), %s447_s26, 128, %s449_s18, %s437_s0  }
  0x40   : > { %457 = sbr.rel (%p1510_p2) target bundleno = 1954 (0x7a2), region = 76  ;;  %s1532_s27 = sand.u32 (!%p1510_p2), 1, %s1318_s30  }
  0x41   : > { %s1535_s20 = sshll.u32 (!%p1510_p2), %s1532_s27, 3  ;;  %s460_s12 = scalar_lea.sflag (!%p1510_p2), [#allocation3], %s1532_s27 }
  0x42   : > { %s463_s17 = scalar_lea.vmem (!%p1510_p2), [#allocation2], %s1535_s20 }
  0x45   : > { %1301 = dma.done.wait (%p1461_p6), %s460_s12, 128  }
  0x46   : > { %1303 = vsyncadd (%p1461_p6), %s460_s12, 4294967168  ;;  %s470_s0 = scalar_lea.sflag [#allocation6], %s1532_s27  ;;  %s473_s25 = scalar_lea.vmem [#allocation5], %s1535_s20 }
  0x47   : > { %1305 = dma.done.wait (%p1461_p6), %s470_s0, 128  }
  0x48   : > { %1307 = vsyncadd (%p1461_p6), %s470_s0, 4294967168  ;;  %v529_v0 = vld [vmem:[%s1725_s2 + $0x10] sm:$0xff]  ;;  %v530_v1 = vld [vmem:[%s1725_s2 + $0x18] sm:$0xff]  ;;  %vm543_vm0 = vcmask 261120   ;;  %s1328_s22 = smov 96   ;;  %s1329_s28 = smov 104  }
  0x49   : > { %v527_v2 = vld [vmem:[%s1725_s2] sm:$0xff]  ;;  %v539_v3 = vpack.c.bf16 %v530_v1, %v529_v0  ;;  %v528_v4 = vld [vmem:[%s1725_s2 + $0x8] sm:$0xff]  ;;  %s1330_s12 = smov 120   ;;  %s1332_s0 = smov 80   ;;  %vm566_vm1 = vcmask 64512   ;;  %v526_v26 = vld [vmem:[%s473_s25] sm:$0xff] }
  0x4a   : > { %v1561_v5 = vld [vmem:[%s463_s17] sm:$0xff]  ;;  %v538_v6 = vpack.c.bf16 %v528_v4, %v527_v2  ;;  %s1331_s17 = smov 88   ;;  %s1333_s29 = smov 72   ;;  %vm603_vm2 = vcmask 1043456   ;;  %vm802_vm3 = vcmask 130048   ;;  %vm804_vm4 = vcmask 195584  }
  0x4b   : > { %553 = vmatpush.bf16.msra.mxu0 %v539_v3  ;;  %v537_v7 = vpack.c.bf16 %v1561_v5, %v1561_v5  ;;  %v1166_v8 = vld [vmem:[%s1726_s3] ss:$0 sm:$0xff]  ;;  %s1334_s21 = smov 112   ;;  %s1335_s25 = smov 64   ;;  %vm913_vm9 = vcmask 523264  }
  0x4c   : > { %s1336_s14 = smov 40   ;;  %s1337_s26 = smov 56  }
  0x4d   : > { %s1338_s23 = smov 48   ;;  %s1339_s18 = smov 8  }
  0x4e   : > { %s1340_s13 = smov 16   ;;  %s1341_s15 = smov 24  }
  0x4f   : > { %554 = vmatpush.bf16.msra.mxu0 %v538_v6  ;;  %s1767_s19 = sld [smem:[#allocation21_spill]] }
  0x52   : > { %1084 = vmatmul.msk.bf16.vlgmr.msra.gmra.mxu0 %vm543_vm0, %v537_v7 }
  0xcf   : > { %v556_v9 = vpop.f32.mrf.mxu0 }
  0xd0   : > { %v557_v10 = vadd.f32 %v1166_v8, %v556_v9 }
  0xd2   : > { %v560_v11 = vmul.f32 0.35355338, %v557_v10  ;;  %v1569_v12 = vpack.c.bf16 %v557_v10, %v557_v10 }
  0xd4   : > { %v561_v13 = vpack.c.bf16 %v560_v11, %v560_v11  ;;  %564 = vrot.lane.b32.xlu0 %v1569_v12, %s1328_s22 }
  0xd6   : > { %733 = vrot.lane.b32.xlu2 %v561_v13, %s1329_s28  ;;  %621 = vrot.lane.b32.xlu1 %v561_v13, %s1330_s12 }
  0xd7   : > { %v558_v14 = vpop.f32.mrf.mxu0 }
  0xdc   : > { %623 = vrot.lane.b32.xlu0 %v1569_v12, %s1331_s17 }
  0xde   : > { %679 = vrot.lane.b32.xlu2 %v1569_v12, %s1332_s0  ;;  %735 = vrot.lane.b32.xlu1 %v1569_v12, %s1333_s29  ;;  %s1769_s0 = sld [smem:[#allocation20_spill]]  ;;  %s523_s29 = scalar_lea.vmem [#allocation7], %s1535_s20 }
  0xdf   : > { %s1276_s20 = scalar_lea.hbm %s1767_s19, 16 }
  0xe4   : > { %677 = vrot.lane.b32.xlu0 %v561_v13, %s1334_s21  ;;  %s977_s21 = sshll.u32 %s523_s29, 4  ;;  %s978_s21 = int_to_ptr.vmem [resolvable:$true] %s977_s21 }
 0x130   : > { %v734_v15 = vpop.permute.xlu2 %733 }
 0x138   : > { %v680_v16 = vpop.permute.xlu2 %679 }
 0x139   : > { %v685_v17 = vsel %vm566_vm1, %v680_v16, 0 }
 0x13a   : > { %694 = vmatpush.bf16.xpose.msrb.mxu0 %v685_v17 }
 0x146   : > { %v565_v18 = vpop.permute.xlu0 %564 }
 0x147   : > { %v571_v19 = vsel %vm566_vm1, %v565_v18, 0 }
 0x148   : > { %580 = vmatpush.bf16.xpose.msra.mxu1 %v571_v19  ;;  %v622_v20 = vpop.permute.xlu1 %621 }
 0x14e   : > { %v624_v21 = vpop.permute.xlu0 %623 }
 0x14f   : > { %1085 = vmatmul.msk.bf16.vlgmr.msra.gmra.mxu1 %vm566_vm1, %v561_v13  ;;  %v629_v22 = vsel %vm566_vm1, %v624_v21, 0 }
 0x150   : > { %638 = vmatpush.bf16.xpose.msra.mxu3 %v629_v22  ;;  %v736_v23 = vpop.permute.xlu1 %735 }
 0x151   : > { %v741_v24 = vsel %vm566_vm1, %v736_v23, 0 }
 0x156   : > { %v678_v25 = vpop.permute.xlu0 %677 }
 0x157   : > { %1087 = vmatmul.msk.bf16.vlgmr.msra.gmra.mxu3 %vm566_vm1, %v622_v20  ;;  %1089 = vmatmul.msk.bf16.vlgmr.msrb.gmra.mxu0 %vm566_vm1, %v678_v25 }
 0x158   : > { %750 = vmatpush.bf16.xpose.msrb.mxu3 %v741_v24 }
 0x167   : > { %1091 = vmatmul.msk.bf16.vlgmr.msrb.gmra.mxu3 %vm566_vm1, %v734_v15 }
 0x1cc   : > { %v582_v27 = vpop.f32.mrf.mxu1 }
 0x1cd   : > { %v583_v28 = vadd.f32 %v582_v27, %v526_v26 }
 0x1cf   : > { %v586_v29 = vsel %vm566_vm1, %v583_v28, -inf }
 0x1d0   : > { %587 = vmax.xlane.f32.xlu1 %v586_v29 }
 0x1d4   : > { %v584_v30 = vpop.f32.mrf.mxu1  ;;  %v696_v31 = vpop.f32.mrf.mxu0 }
 0x1d5   : > { %v697_v36 = vadd.f32 %v696_v31, %v526_v26 }
 0x1d7   : > { %v700_v38 = vsel %vm566_vm1, %v697_v36, -inf }
 0x1da   : > { %v640_v32 = vpop.f32.mrf.mxu3 }
 0x1db   : > { %v641_v33 = vadd.f32 %v640_v32, %v526_v26  ;;  %v534_v32 = vld [vmem:[%s1727_s4 + $0x10] sm:$0xff] }
 0x1dc   : > { %v698_v34 = vpop.f32.mrf.mxu0 }
 0x1dd   : > { %v644_v35 = vsel %vm566_vm1, %v641_v33, -inf  ;;  %v532_v34 = vld [vmem:[%s1727_s4] sm:$0xff] }
 0x1de   : > { %645 = vmax.xlane.f32.xlu2 %v644_v35 }
 0x1e2   : > { %v642_v37 = vpop.f32.mrf.mxu3 }
 0x1e6   : > { %701 = vmax.xlane.f32.xlu2 %v700_v38 }
 0x1ea   : > { %v752_v39 = vpop.f32.mrf.mxu3 }
 0x1eb   : > { %v753_v40 = vadd.f32 %v752_v39, %v526_v26 }
 0x1ed   : > { %v756_v41 = vsel %vm566_vm1, %v753_v40, -inf }
 0x1ee   : > { %757 = vmax.xlane.f32.xlu0 %v756_v41 }
 0x1f2   : > { %v754_v42 = vpop.f32.mrf.mxu3 }
 0x1fe   : > { %598 = vrot.lane.b32.xlu2 %v1569_v12, %s1335_s25 }
 0x206   : > { %768 = vrot.lane.b32.xlu2 %v1569_v12, %s1336_s14  ;;  %s1765_s14 = sld [smem:[#allocation13_spill]] }
 0x243   : > { %v588_v43 = vpop.xlane.xlu1 %587 }
 0x244   : > { %v589_v44 = vsub.f32 %v583_v28, %v588_v43 }
 0x246   : > { %v590_v45 = vmul.f32 1.442695, %v589_v44 }
 0x248   : > { %1174 = vpow2.f32 %v590_v45  ;;  %v1167_v45 = vld [vmem:[%s1728_s5] ss:$0 sm:$0xff] }
 0x24e   : > { %v1175_v46 = vpop.eup %1174 }
 0x24f   : > { %v592_v47 = vsel %vm566_vm1, %v1175_v46, 0.0 }
 0x250   : > { %593 = vadd.xlane.f32.xlu1 %v592_v47 }
 0x251   : > { %v646_v48 = vpop.xlane.xlu2 %645 }
 0x252   : > { %v647_v51 = vsub.f32 %v641_v33, %v646_v48  ;;  %v535_v33 = vld [vmem:[%s1727_s4 + $0x18] sm:$0xff] }
 0x253   : > { %v808_v35 = vpack.c.bf16 %v535_v33, %v534_v32  ;;  %v1170_v33 = vld [vmem:[%s1732_s9] ss:$0 sm:$0xff] }
 0x254   : > { %v648_v53 = vmul.f32 1.442695, %v647_v51  ;;  %v1342_v51 = vmov 32.0  }
 0x255   : > { %821 = vmatpush.bf16.msra.mxu0 %v808_v35 }
 0x259   : > { %v702_v49 = vpop.xlane.xlu2 %701 }
 0x25a   : > { %v703_v50 = vsub.f32 %v697_v36, %v702_v49  ;;  %v533_v36 = vld [vmem:[%s1727_s4 + $0x8] sm:$0xff] }
 0x25b   : > { %v807_v37 = vpack.c.bf16 %v533_v36, %v532_v34 }
 0x25c   : > { %v704_v52 = vmul.f32 1.442695, %v703_v50 }
 0x25d   : > { %822 = vmatpush.bf16.msra.mxu0 %v807_v37 }
 0x25e   : > { %1176 = vpow2.f32 %v704_v52 }
 0x25f   : > { %1178 = vpow2.f32 %v648_v53 }
 0x261   : > { %v599_v54 = vpop.permute.xlu2 %598  ;;  %v758_v55 = vpop.xlane.xlu0 %757 }
 0x262   : > { %v605_v56 = vsel %vm603_vm2, %v599_v54, 0  ;;  %v759_v58 = vsub.f32 %v753_v40, %v758_v55 }
 0x263   : > { %614 = vmatpush.bf16.msra.mxu2 %v605_v56 }
 0x264   : > { %v1177_v57 = vpop.eup %1176  ;;  %v760_v60 = vmul.f32 1.442695, %v759_v58 }
 0x265   : > { %v706_v59 = vsel %vm566_vm1, %v1177_v57, 0.0  ;;  %v1179_v61 = vpop.eup %1178 }
 0x266   : > { %707 = vadd.xlane.f32.xlu0 %v706_v59  ;;  %1180 = vpow2.f32 %v760_v60  ;;  %v650_v62 = vsel %vm566_vm1, %v1179_v61, 0.0 }
 0x269   : > { %656 = vrot.lane.b32.xlu1 %v1569_v12, %s1337_s26  ;;  %v769_v7 = vpop.permute.xlu2 %768  ;;  %s1097_s26 = sshll.u32 %s1765_s14, 3  ;;  %s965_s14 = scalar_lea.sflag [#allocation4], %s1532_s27 }
 0x26a   : > { %v774_v10 = vsel %vm603_vm2, %v769_v7, 0  ;;  %v900_v7 = vld [vmem:[%s1733_s10 + $0x20] sm:$0xff]  ;;  %s975_s22 = scalar_lea.hbm %s1767_s19, %s1097_s26 }
 0x26b   : > { %s979_s25 = sshll.u32 %s975_s22, 4  ;;  %s980_s25 = int_to_ptr.hbm [resolvable:$true] %s979_s25 }
 0x26c   : > { %v1181_v63 = vpop.eup %1180 }
 0x26d   : > { %v762_v0 = vsel %vm566_vm1, %v1181_v63, 0.0 }
 0x26e   : > { %651 = vadd.xlane.f32.xlu0 %v650_v62  ;;  %v870_v62 = vld [vmem:[%s1731_s8 + $0x10] sm:$0xff] }
 0x276   : > { %763 = vadd.xlane.f32.xlu0 %v762_v0 }
 0x28a   : > { %712 = vrot.lane.b32.xlu0 %v1569_v12, %s1338_s23  ;;  %s1270_s23 = sshra.s32 %s980_s25, 4  ;;  %s1271_s23 = int_to_ptr.hbm [resolvable:$true] %s1270_s23 }
 0x28b   : > { %s1272_s26 = scalar_lea.hbm %s1271_s23, 8  ;;  %p1277_p10 = scmp.lt.s32.totalorder %s1271_s23, %s1767_s19 }
 0x28c   : > { %p1273_p6 = scmp.ne.s32.totalorder %s1271_s23, %s1272_s26  ;;  %p1278_p2 = scmp.lt.s32.totalorder %s1276_s20, %s1272_s26 }
 0x28e   : > { %p1274_p13 = pnand %p1273_p6, %p1468_p11  ;;  %p1279_p9 = por %p1278_p2, %p1277_p10 }
 0x290   : > { %p1275_p3 = pneg %p1274_p13 }
 0x292   : > { %p1280_p0 = pnand %p1279_p9, %p1275_p3 }
 0x2c3   : > { %v594_v1 = vpop.xlane.xlu1 %593 }
 0x2c4   : > { %1182 = vrcp.f32 %v594_v1  ;;  %v868_v1 = vld [vmem:[%s1731_s8] sm:$0xff] }
 0x2ca   : > { %v1183_v2 = vpop.eup %1182 }
 0x2cb   : > { %v596_v3 = vmul.f32 %v1183_v2, %v1175_v46  ;;  %v869_v2 = vld [vmem:[%s1731_s8 + $0x8] sm:$0xff] }
 0x2cd   : > { %v597_v4 = vpack.c.bf16 %v596_v3, %v596_v3  ;;  %v874_v3 = vpack.c.bf16 %v869_v2, %v868_v1 }
 0x2cf   : > { %1086 = vmatmul.msk.bf16.vlgmr.msra.gmra.mxu2 %vm566_vm1, %v597_v4  ;;  %v902_v4 = vld [vmem:[%s1733_s10 + $0x30] sm:$0xff] }
 0x2d9   : > { %v708_v6 = vpop.xlane.xlu0 %707 }
 0x2db   : > { %v657_v8 = vpop.permute.xlu1 %656 }
 0x2dc   : > { %v662_v9 = vsel %vm603_vm2, %v657_v8, 0 }
 0x2dd   : > { %671 = vmatpush.bf16.msrb.mxu2 %v662_v9 }
 0x2e1   : > { %783 = vmatpush.bf16.msra.mxu2 %v774_v10  ;;  %v652_v11 = vpop.xlane.xlu0 %651  ;;  %v901_v10 = vld [vmem:[%s1733_s10 + $0x28] sm:$0xff] }
 0x2e2   : > { %1184 = vrcp.f32 %v652_v11 }
 0x2e8   : > { %v1185_v13 = vpop.eup %1184 }
 0x2e9   : > { %v654_v12 = vmul.f32 %v1185_v13, %v1179_v61  ;;  %v764_v14 = vpop.xlane.xlu0 %763  ;;  %v908_v13 = vpack.c.bf16 %v901_v10, %v900_v7 }
 0x2ea   : > { %1186 = vrcp.f32 %v764_v14  ;;  %v898_v14 = vld [vmem:[%s1733_s10 + $0x10] sm:$0xff] }
 0x2eb   : > { %v655_v15 = vpack.c.bf16 %v654_v12, %v654_v12  ;;  %1188 = vrcp.f32 %v708_v6  ;;  %v903_v6 = vld [vmem:[%s1733_s10 + $0x38] sm:$0xff] }
 0x2ec   : > { %1190 = vrcp.f32 %v1342_v51  ;;  %v909_v9 = vpack.c.bf16 %v903_v6, %v902_v4 }
 0x2ed   : > { %1088 = vmatmul.msk.bf16.vlgmr.msrb.gmra.mxu2 %vm566_vm1, %v655_v15  ;;  %v899_v15 = vld [vmem:[%s1733_s10 + $0x18] sm:$0xff] }
 0x2ee   : > { %921 = vmatpush.bf16.msra.mxu3 %v909_v9 }
 0x2f0   : > { %v1187_v16 = vpop.eup %1186 }
 0x2f1   : > { %v766_v17 = vmul.f32 %v1187_v16, %v1181_v63  ;;  %v1189_v18 = vpop.eup %1188  ;;  %v871_v63 = vld [vmem:[%s1731_s8 + $0x18] sm:$0xff]  ;;  %v907_v16 = vpack.c.bf16 %v899_v15, %v898_v14 }
 0x2f2   : > { %v710_v19 = vmul.f32 %v1189_v18, %v1177_v57  ;;  %v1191_v52 = vpop.eup %1190  ;;  %v875_v0 = vpack.c.bf16 %v871_v63, %v870_v62  ;;  %922 = vmatpush.bf16.msra.mxu3 %v908_v13 }
 0x2f3   : > { %v767_v20 = vpack.c.bf16 %v766_v17, %v766_v17  ;;  %v835_v53 = vmul.f32 32.0, %v1191_v52  ;;  %vm839_vm5 = vweird.f32 %v1191_v52 }
 0x2f4   : > { %v711_v23 = vpack.c.bf16 %v710_v19, %v710_v19 }
 0x2f5   : > { %v836_v54 = vsub.f32 1.0, %v835_v53 }
 0x2f6   : > { %923 = vmatpush.bf16.msra.mxu3 %v907_v16 }
 0x2f7   : > { %v837_v55 = vmul.f32 %v1191_v52, %v836_v54 }
 0x2f9   : > { %v838_v56 = vadd.f32 %v1191_v52, %v837_v55 }
 0x2fb   : > { %v1624_v57 = vsel %vm839_vm5, %v1191_v52, %v838_v56 }
 0x2fc   : > { %v713_v21 = vpop.permute.xlu0 %712 }
 0x2fd   : > { %1092 = vmatmul.msk.bf16.vlgmr.msra.gmra.mxu2 %vm566_vm1, %v767_v20  ;;  %v718_v22 = vsel %vm603_vm2, %v713_v21, 0 }
 0x2fe   : > { %727 = vmatpush.bf16.msrb.mxu1 %v718_v22 }
 0x301   : > { %1090 = vmatmul.msk.bf16.vlgmr.msrb.gmra.mxu1 %vm566_vm1, %v711_v23  ;;  %v1168_v23 = vld [vmem:[%s1729_s6] ss:$0 sm:$0xff] }
 0x302   : > { %888 = vmatpush.bf16.msra.mxu1 %v875_v0 }
 0x306   : > { %889 = vmatpush.bf16.msra.mxu1 %v874_v3 }
 0x352   : > { %v616_v24 = vpop.f32.mrf.mxu2 }
 0x35a   : > { %v618_v25 = vpop.f32.mrf.mxu2 }
 0x35b   : > { %v1169_v25 = vld [vmem:[%s1730_s7] ss:$0 sm:$0xff] }
 0x370   : > { %v673_v26 = vpop.f32.mrf.mxu2 }
 0x371   : > { %790 = vrot.lane.b32.xlu1 %v673_v26, %s1339_s18 }
 0x378   : > { %v675_v27 = vpop.f32.mrf.mxu2 }
 0x37e   : > { %v729_v28 = vpop.f32.mrf.mxu1 }
 0x37f   : > { %794 = vrot.lane.b32.xlu2 %v729_v28, %s1340_s13  ;;  %s1766_s13 = sld [smem:[#allocation19_spill]] }
 0x380   : > { %v785_v29 = vpop.f32.mrf.mxu2 }
 0x381   : > { %798 = vrot.lane.b32.xlu1 %v785_v29, %s1341_s15 }
 0x386   : > { %v731_v30 = vpop.f32.mrf.mxu1 }
 0x387   : > { %v896_v30 = vld [vmem:[%s1733_s10] sm:$0xff] }
 0x388   : > { %v787_v31 = vpop.f32.mrf.mxu2 }
 0x389   : > { %v897_v31 = vld [vmem:[%s1733_s10 + $0x8] sm:$0xff] }
 0x38a   : > { %v906_v32 = vpack.c.bf16 %v897_v31, %v896_v30 }
 0x38c   : > { %924 = vmatpush.bf16.msra.mxu3 %v906_v32 }
 0x3d9   : > { %v795_v40 = vpop.permute.xlu2 %794 }
 0x3e3   : > { %v791_v38 = vpop.permute.xlu1 %790 }
 0x3e4   : > { %v801_v39 = vsel %vm566_vm1, %v616_v24, %v791_v38 }
 0x3e5   : > { %v803_v41 = vsel %vm802_vm3, %v801_v39, %v795_v40  ;;  %v1171_v39 = vld [vmem:[%s1734_s11] ss:$0 sm:$0xff] }
 0x3f3   : > { %v799_v42 = vpop.permute.xlu1 %798 }
 0x3f4   : > { %v805_v43 = vsel %vm804_vm4, %v803_v41, %v799_v42 }
 0x3f5   : > { %v806_v44 = vpack.c.bf16 %v805_v43, %v805_v43 }
 0x3f7   : > { %1093 = vmatmul.msk.bf16.vlgmr.msra.gmra.mxu0 %vm543_vm0, %v806_v44 }
 0x474   : > { %v824_v46 = vpop.f32.mrf.mxu0 }
 0x475   : > { %v825_v47 = vadd.f32 %v1167_v45, %v824_v46 }
 0x477   : > { %v828_v48 = vadd.f32 %v825_v47, %v1561_v5 }
 0x479   : > { %v831_v49 = vsel %vm543_vm0, %v828_v48, 0.0 }
 0x47a   : > { %832 = vadd.xlane.f32.xlu2 %v831_v49 }
 0x47c   : > { %v826_v50 = vpop.f32.mrf.mxu0 }
 0x4ed   : > { %v833_v58 = vpop.xlane.xlu2 %832 }
 0x4ee   : > { %v841_v59 = vmul.f32 %v1624_v57, %v833_v58 }
 0x4f0   : > { %v842_v60 = vsub.f32 %v828_v48, %v841_v59 }
 0x4f2   : > { %v843_v61 = vmul.f32 %v842_v60, %v842_v60 }
 0x4f4   : > { %v844_v5 = vsel %vm543_vm0, %v843_v61, 0.0 }
 0x4f5   : > { %845 = vadd.xlane.f32.xlu1 %v844_v5  ;;  %v1173_v5 = vld [vmem:[%s1769_s0] ss:$0 sm:$0xff] }
 0x568   : > { %v846_v8 = vpop.xlane.xlu1 %845 }
 0x569   : > { %v847_v11 = vmul.f32 %v846_v8, %v1624_v57 }
 0x56b   : > { %v848_v12 = vadd.f32 1e-05, %v847_v11 }
 0x56d   : > { %1192 = vrsqrt.f32 %v848_v12  ;;  %vm855_vm7 = vweird.f32 %v848_v12 }
 0x573   : > { %v1193_v17 = vpop.eup %1192 }
 0x574   : > { %v850_v18 = vmul.f32 %v1193_v17, %v848_v12  ;;  %vm856_vm6 = vweird.f32 %v1193_v17 }
 0x575   : > { %vm857_vm8 = vmor %vm855_vm7, %vm856_vm6 }
 0x576   : > { %v851_v19 = vmul.f32 %v1193_v17, %v850_v18 }
 0x578   : > { %v852_v20 = vmul.f32 0.5, %v851_v19 }
 0x57a   : > { %v853_v21 = vsub.f32 1.5, %v852_v20 }
 0x57c   : > { %v854_v22 = vmul.f32 %v1193_v17, %v853_v21 }
 0x57e   : > { %v858_v24 = vsel %vm857_vm8, %v1193_v17, %v854_v22 }
 0x57f   : > { %v859_v26 = vmul.f32 %v858_v24, %v842_v60  ;;  %v1172_v60 = vld [vmem:[%s1766_s13] ss:$0 sm:$0xff] }
 0x581   : > { %v863_v27 = vmul.f32 %v1168_v23, %v859_v26 }
 0x583   : > { %v867_v28 = vadd.f32 %v1169_v25, %v863_v27 }
 0x585   : > { %v873_v29 = vpack.c.bf16 %v867_v28, %v867_v28 }
 0x587   : > { %1094 = vmatmul.msk.bf16.vlgmr.msra.gmra.mxu1 %vm543_vm0, %v873_v29 }
 0x604   : > { %v891_v34 = vpop.f32.mrf.mxu1 }
 0x605   : > { %v892_v35 = vadd.f32 %v1170_v33, %v891_v34 }
 0x607   : > { %v895_v36 = vmax.f32 %v892_v35, 0.0 }
 0x609   : > { %v905_v37 = vpack.c.bf16 %v895_v36, %v895_v36 }
 0x60b   : > { %1095 = vmatmul.msk.bf16.vlgmr.msra.gmra.mxu3 %vm913_vm9, %v905_v37 }
 0x60c   : > { %v893_v38 = vpop.f32.mrf.mxu1 }
 0x68e   : > { %v926_v40 = vpop.f32.mrf.mxu3 }
 0x68f   : > { %v927_v41 = vadd.f32 %v1171_v39, %v926_v40 }
 0x691   : > { %v930_v42 = vadd.f32 %v927_v41, %v867_v28 }
 0x693   : > { %v933_v43 = vsel %vm543_vm0, %v930_v42, 0.0 }
 0x694   : > { %934 = vadd.xlane.f32.xlu0 %v933_v43 }
 0x696   : > { %v928_v44 = vpop.f32.mrf.mxu3 }
 0x707   : > { %v935_v45 = vpop.xlane.xlu0 %934 }
 0x708   : > { %v936_v46 = vmul.f32 %v935_v45, %v1624_v57 }
 0x70a   : > { %v937_v47 = vsub.f32 %v930_v42, %v936_v46 }
 0x70c   : > { %v938_v48 = vmul.f32 %v937_v47, %v937_v47 }
 0x70e   : > { %v939_v49 = vsel %vm543_vm0, %v938_v48, 0.0 }
 0x70f   : > { %940 = vadd.xlane.f32.xlu2 %v939_v49 }
 0x782   : > { %v941_v50 = vpop.xlane.xlu2 %940 }
 0x783   : > { %v942_v51 = vmul.f32 %v941_v50, %v1624_v57 }
 0x785   : > { %v943_v52 = vadd.f32 1e-05, %v942_v51 }
 0x787   : > { %1194 = vrsqrt.f32 %v943_v52  ;;  %vm950_vm11 = vweird.f32 %v943_v52 }
 0x78d   : > { %v1195_v53 = vpop.eup %1194 }
 0x78e   : > { %v945_v54 = vmul.f32 %v1195_v53, %v943_v52  ;;  %vm951_vm10 = vweird.f32 %v1195_v53 }
 0x78f   : > { %vm952_vm12 = vmor %vm950_vm11, %vm951_vm10 }
 0x790   : > { %v946_v55 = vmul.f32 %v1195_v53, %v945_v54 }
 0x792   : > { %v947_v56 = vmul.f32 0.5, %v946_v55 }
 0x794   : > { %v948_v58 = vsub.f32 1.5, %v947_v56 }
 0x796   : > { %v949_v59 = vmul.f32 %v1195_v53, %v948_v58 }
 0x798   : > { %v953_v57 = vsel %vm952_vm12, %v1195_v53, %v949_v59 }
 0x799   : > { %v954_v61 = vmul.f32 %v953_v57, %v937_v47 }
 0x79b   : > { %v958_v62 = vmul.f32 %v1172_v60, %v954_v61 }
 0x79d   : > { %v962_v63 = vadd.f32 %v1173_v5, %v958_v62 }
 0x79f   : > { %963 = vst.msk [vmem:[%s523_s29] sm:$0xff] %vm543_vm0, %v962_v63 }
 0x7a0   : > { %1283 = shalt.err (!%p1280_p0)
}
 0x7a1   : > { %1104 = dma.vmem_to_hbm [thread:$0]  (%p1468_p11), %s978_s21, 128, %s980_s25, %s965_s14  }
 0x7a2 PF: > { %s1770_s27 = sld [smem:[#allocation11_spill]]  ;;  %p1772_p1 = scmp.ge.s32.totalorder %s1326_s16, 2 }
 0x7a4   : > { %p1114_p4 = pnand %p1772_p1, %p1472_p12 }
 0x7a6   : > { %p1115_p7 = pneg %p1114_p4 }
 0x7a8   : > { %s991_s12 = sand.u32 1, %s1770_s27  }
 0x7a9   : > { %s992_s17 = scalar_lea.sflag [#allocation4], %s991_s12 }
 0x7aa   : > { %1309 = dma.done.wait (%p1115_p7), %s992_s17, 128  }
 0x7ab   : > { %1311 = vsyncadd (%p1115_p7), %s992_s17, 4294967168  ;;  %s1773_s16 = sld [smem:[#allocation14_spill]]  ;;  %s1776_s29 = smov %s1318_s30 }
 0x7ac   : > { %s1774_s0 = sld [smem:[#allocation12_spill]] }
 0x7ad   : > { %s1775_s15 = sld [smem:[#allocation15_spill]] }
 0x7b1   : > { %p30_p5 = scmp.ge.s32.totalorder %s1773_s16, 4  }
 0x7b2   : > { %s1777_s30 = smov %s1774_s0 }
 0x7b3   :  { %32 = sbr.rel (!%p30_p5) target bundleno = 12 (0xc), region = 134 }
 0x7b8   :  { %998 = vsyncpa [#allocation3], 1 }
 0x7b9   :  { %1000 = vsyncpa [#allocation3 + $0x1], 1 }
 0x7ba   :  { %1001 = vsyncpa [#allocation6], 1 }
 0x7bb   :  { %1003 = vsyncpa [#allocation6 + $0x1], 1 }
 0x7bc   :  { %1004 = vsyncpa [#allocation4], 1 }
 0x7bd   :  { %1006 = vsyncpa [#allocation4 + $0x1], 1 }

</bundles_post_ra>
